<compile_context>
chip_gen: v7x
topology: tpu7x:2x2x1
jax: 0.10.0
libtpu: 0.0.40
codegen_flags: <defaults>
</compile_context>

<pallas_src>
import math
import functools

import jax
import jax.numpy as jnp
from jax.experimental import pallas as pl
from jax.experimental.pallas import tpu as pltpu

LN_EPS = 1e-5          # torch.nn.LayerNorm default
NEG_INF = -1e30

# Set to jnp.bfloat16 to feed the MXU in bf16 (f32 accumulation is kept via
# preferred_element_type). Default f32 to match the torch reference numerics.
MATMUL_DTYPE = jnp.float32


def _layernorm(x, gamma, beta):
    mu = jnp.mean(x, axis=-1, keepdims=True)
    var = jnp.mean((x - mu) ** 2, axis=-1, keepdims=True)
    return (x - mu) * jax.lax.rsqrt(var + LN_EPS) * gamma + beta


def _pick_tile(dim, candidates):
    """Largest candidate tile that evenly divides `dim`; fall back to the full
    dim (a full-extent block always satisfies the (8,128) tiling rule)."""
    for c in candidates:
        if dim % c == 0:
            return c
    return dim


def _vmem_limit(block_bytes):
    # ~2x the resident tile working set (double buffers) + slack, clamped to a
    # budget that is safe on v5e (128 MiB), v6e (128 MiB) and v7x (64 MiB / TC).
    return int(min(max(2 * block_bytes + (4 << 20), 16 << 20), 40 << 20))


# --------------------------------------------------------------------------
# Kernel 1: LN1 + per-head QKV projection (scale folded into Q)
# --------------------------------------------------------------------------
def _qkv_kernel(x_ref, ln1_g_ref, ln1_b_ref, wq_ref, wk_ref, wv_ref,
                q_ref, k_ref, v_ref, *, inv_sqrt_d):
    xn = _layernorm(x_ref[0].astype(jnp.float32), ln1_g_ref[0], ln1_b_ref[0])
    xn = xn.astype(MATMUL_DTYPE)
    q = jnp.dot(xn, wq_ref[0].astype(MATMUL_DTYPE), preferred_element_type=jnp.float32)
    k = jnp.dot(xn, wk_ref[0].astype(MATMUL_DTYPE), preferred_element_type=jnp.float32)
    v = jnp.dot(xn, wv_ref[0].astype(MATMUL_DTYPE), preferred_element_type=jnp.float32)
    q_ref[0, 0] = (q * inv_sqrt_d).astype(q_ref.dtype)   # fold 1/sqrt(Dh) into Q
    k_ref[0, 0] = k.astype(k_ref.dtype)
    v_ref[0, 0] = v.astype(v_ref.dtype)


# --------------------------------------------------------------------------
# Kernel 2: flash-style causal attention (online softmax over KV tiles)
# --------------------------------------------------------------------------
def _attn_kernel(q_ref, k_ref, v_ref, o_ref, m_sc, l_sc, acc_sc, *, tq, tk):
    qi = pl.program_id(2)
    ki = pl.program_id(3)

    @pl.when(ki == 0)
    def _init():
        m_sc[...] = jnp.full(m_sc.shape, -jnp.inf, m_sc.dtype)
        l_sc[...] = jnp.zeros(l_sc.shape, l_sc.dtype)
        acc_sc[...] = jnp.zeros(acc_sc.shape, acc_sc.dtype)

    q_start = qi * tq
    k_start = ki * tk

    # Skip KV tiles strictly above the causal diagonal (no FLOPs spent on them).
    @pl.when(k_start <= q_start + (tq - 1))
    def _update():
        q = q_ref[0, 0].astype(MATMUL_DTYPE)                 # (TQ, Dh), pre-scaled
        k = k_ref[0, 0].astype(MATMUL_DTYPE)                 # (TK, Dh)
        s = jax.lax.dot_general(q, k, (((1,), (1,)), ((), ())),
                                preferred_element_type=jnp.float32)   # (TQ, TK)
        rows = q_start + jax.lax.broadcasted_iota(jnp.int32, (tq, tk), 0)
        cols = k_start + jax.lax.broadcasted_iota(jnp.int32, (tq, tk), 1)
        s = jnp.where(cols <= rows, s, NEG_INF)

        m_prev = m_sc[...]
        m_new = jnp.maximum(m_prev, jnp.max(s, axis=-1, keepdims=True))
        alpha = jnp.exp(m_prev - m_new)
        p = jnp.exp(s - m_new)
        l_sc[...] = alpha * l_sc[...] + jnp.sum(p, axis=-1, keepdims=True)
        acc_sc[...] = alpha * acc_sc[...] + jnp.dot(
            p.astype(MATMUL_DTYPE), v_ref[0, 0].astype(MATMUL_DTYPE),
            preferred_element_type=jnp.float32)
        m_sc[...] = m_new

    @pl.when(ki == pl.num_programs(3) - 1)
    def _finalize():
        o_ref[0, 0] = (acc_sc[...] * pl.reciprocal(l_sc[...], approx=True)
                       ).astype(o_ref.dtype)


# --------------------------------------------------------------------------
# Kernel 3: output projection (+residual), LN2, hidden-tiled FFN (+residual)
# --------------------------------------------------------------------------
def _out_ffn_kernel(x_ref, o_ref, wo_ref, ln2_g_ref, ln2_b_ref,
                    w1_ref, b1_ref, w2_ref, b2_ref, out_ref,
                    attn_sc, yn_sc, acc_sc, *, num_heads):
    fi = pl.program_id(2)

    @pl.when(fi == 0)
    def _prologue():
        # Per-head out-projection accumulated into one (TL, E) buffer: no
        # concat / transpose, live state bounded to a single accumulator.
        a = x_ref[0].astype(jnp.float32)
        for h in range(num_heads):
            a = a + jnp.dot(o_ref[0, h].astype(MATMUL_DTYPE),
                            wo_ref[h].astype(MATMUL_DTYPE),
                            preferred_element_type=jnp.float32)
        attn_sc[...] = a
        yn_sc[...] = _layernorm(a, ln2_g_ref[0], ln2_b_ref[0])
        acc_sc[...] = jnp.zeros(acc_sc.shape, acc_sc.dtype)

    # One hidden-dim tile of the FFN; exact-erf GELU fused so the (L, 4E)
    # activation is never materialized.
    h1 = jnp.dot(yn_sc[...].astype(MATMUL_DTYPE), w1_ref[...].astype(MATMUL_DTYPE),
                 preferred_element_type=jnp.float32) + b1_ref[0]
    h1 = jax.nn.gelu(h1, approximate=False)          # torch nn.GELU() default
    acc_sc[...] += jnp.dot(h1.astype(MATMUL_DTYPE), w2_ref[...].astype(MATMUL_DTYPE),
                           preferred_element_type=jnp.float32)

    @pl.when(fi == pl.num_programs(2) - 1)
    def _epilogue():
        out_ref[0] = (acc_sc[...] + b2_ref[0] + attn_sc[...]).astype(out_ref.dtype)


# --------------------------------------------------------------------------
# Wrapper
# --------------------------------------------------------------------------
def transformer_forward(tokens, params, *, num_heads, head_dim):
    N, L, E = tokens.shape
    H, Dh = num_heads, head_dim
    hdh = H * Dh
    F4 = 4 * E

    # Wrapper-side weight re-layout (plain XLA, once): column order of the
    # pre-transposed Wqkv is (q|k|v) major, then head, then Dh -- matches torch.
    wqkv = params["wqkv"]
    wq = wqkv[:, 0 * hdh:1 * hdh].reshape(E, H, Dh).transpose(1, 0, 2)   # (H, E, Dh)
    wk = wqkv[:, 1 * hdh:2 * hdh].reshape(E, H, Dh).transpose(1, 0, 2)
    wv = wqkv[:, 2 * hdh:3 * hdh].reshape(E, H, Dh).transpose(1, 0, 2)
    wo = params["wo"].reshape(H, Dh, E)                                  # per-head rows

    # Tile sizes (fall back to full extents at small shapes -> always legal).
    TL = _pick_tile(L, (256, 128))          # sequence / query tile
    TK = _pick_tile(L, (256, 128))          # KV tile for flash attention
    TF = _pick_tile(F4, (512, 256, 128))    # FFN hidden tile (lane-aligned)

    fdt = jnp.float32

    # ---------------- Kernel 1: QKV projection ----------------
    qkv_bytes = 4 * (TL * E + 2 * E + 3 * E * Dh + 3 * TL * Dh)
    q, k, v = pl.pallas_call(
        functools.partial(_qkv_kernel, inv_sqrt_d=1.0 / math.sqrt(Dh)),
        out_shape=(jax.ShapeDtypeStruct((N, H, L, Dh), fdt),) * 3,
        grid_spec=pltpu.PrefetchScalarGridSpec(
            num_scalar_prefetch=0,
            grid=(N, L // TL, H),
            in_specs=[
                pl.BlockSpec((1, TL, E), lambda n, i, h: (n, i, 0)),   # tokens
                pl.BlockSpec((1, E), lambda n, i, h: (0, 0)),          # ln1 gamma
                pl.BlockSpec((1, E), lambda n, i, h: (0, 0)),          # ln1 beta
                pl.BlockSpec((1, E, Dh), lambda n, i, h: (h, 0, 0)),   # Wq[h]
                pl.BlockSpec((1, E, Dh), lambda n, i, h: (h, 0, 0)),   # Wk[h]
                pl.BlockSpec((1, E, Dh), lambda n, i, h: (h, 0, 0)),   # Wv[h]
            ],
            out_specs=[
                pl.BlockSpec((1, 1, TL, Dh), lambda n, i, h: (n, h, i, 0)),
                pl.BlockSpec((1, 1, TL, Dh), lambda n, i, h: (n, h, i, 0)),
                pl.BlockSpec((1, 1, TL, Dh), lambda n, i, h: (n, h, i, 0)),
            ],
        ),
        compiler_params=pltpu.CompilerParams(
            dimension_semantics=("parallel", "parallel", "parallel"),
            vmem_limit_bytes=_vmem_limit(qkv_bytes),
        ),
    )(tokens, params["ln1_g"], params["ln1_b"], wq, wk, wv)

    # ---------------- Kernel 2: flash causal attention ----------------
    attn_bytes = 4 * (2 * TL * Dh + 2 * TK * Dh + 2 * TL + TL * Dh)
    o = pl.pallas_call(
        functools.partial(_attn_kernel, tq=TL, tk=TK),
        out_shape=jax.ShapeDtypeStruct((N, H, L, Dh), fdt),
        grid_spec=pltpu.PrefetchScalarGridSpec(
            num_scalar_prefetch=0,
            grid=(N, H, L // TL, L // TK),
            in_specs=[
                pl.BlockSpec((1, 1, TL, Dh), lambda n, h, i, j: (n, h, i, 0)),  # Q
                pl.BlockSpec((1, 1, TK, Dh), lambda n, h, i, j: (n, h, j, 0)),  # K
                pl.BlockSpec((1, 1, TK, Dh), lambda n, h, i, j: (n, h, j, 0)),  # V
            ],
            out_specs=pl.BlockSpec((1, 1, TL, Dh), lambda n, h, i, j: (n, h, i, 0)),
            scratch_shapes=[
                pltpu.VMEM((TL, 1), jnp.float32),     # running max
                pltpu.VMEM((TL, 1), jnp.float32),     # running denom
                pltpu.VMEM((TL, Dh), jnp.float32),    # running numerator
            ],
        ),
        compiler_params=pltpu.CompilerParams(
            dimension_semantics=("parallel", "parallel", "parallel", "arbitrary"),
            vmem_limit_bytes=_vmem_limit(attn_bytes),
        ),
    )(q, k, v)

    # ---------------- Kernel 3: out-proj + residual + FFN ----------------
    ffn_bytes = 4 * (2 * TL * E + H * TL * Dh + hdh * E + 4 * E
                     + E * TF + TF + TF * E + E + 3 * TL * E)
    out = pl.pallas_call(
        functools.partial(_out_ffn_kernel, num_heads=H),
        out_shape=jax.ShapeDtypeStruct((N, L, E), tokens.dtype),
        grid_spec=pltpu.PrefetchScalarGridSpec(
            num_scalar_prefetch=0,
            grid=(N, L // TL, F4 // TF),
            in_specs=[
                pl.BlockSpec((1, TL, E), lambda n, i, f: (n, i, 0)),         # tokens (residual)
                pl.BlockSpec((1, H, TL, Dh), lambda n, i, f: (n, 0, i, 0)),  # per-head attn out
                pl.BlockSpec((H, Dh, E), lambda n, i, f: (0, 0, 0)),         # Wo (per-head)
                pl.BlockSpec((1, E), lambda n, i, f: (0, 0)),                # ln2 gamma
                pl.BlockSpec((1, E), lambda n, i, f: (0, 0)),                # ln2 beta
                pl.BlockSpec((E, TF), lambda n, i, f: (0, f)),               # W1 hidden tile
                pl.BlockSpec((1, TF), lambda n, i, f: (0, f)),               # b1 hidden tile
                pl.BlockSpec((TF, E), lambda n, i, f: (f, 0)),               # W2 hidden tile
                pl.BlockSpec((1, E), lambda n, i, f: (0, 0)),                # b2
            ],
            out_specs=pl.BlockSpec((1, TL, E), lambda n, i, f: (n, i, 0)),
            scratch_shapes=[
                pltpu.VMEM((TL, E), jnp.float32),     # attn_out (residual base)
                pltpu.VMEM((TL, E), jnp.float32),     # LN2 output
                pltpu.VMEM((TL, E), jnp.float32),     # FFN accumulator
            ],
        ),
        compiler_params=pltpu.CompilerParams(
            dimension_semantics=("parallel", "parallel", "arbitrary"),
            vmem_limit_bytes=_vmem_limit(ffn_bytes),
        ),
    )(tokens, o, wo, params["ln2_g"], params["ln2_b"],
      params["w1"], params["b1"], params["w2"], params["b2"])

    return out


# --------------------------------------------------------------------------
# Params + pure-JAX reference (mirrors the torch module math exactly)
# --------------------------------------------------------------------------
def init_params(key, embedding_dim, num_heads, head_dim):
    E = embedding_dim
    hdh = num_heads * head_dim
    ks = jax.random.split(key, 6)
    scale = 0.02
    return {
        # stored pre-transposed: (in_features, out_features)
        "wqkv": scale * jax.random.normal(ks[0], (E, 3 * hdh), jnp.float32),
        "wo":   scale * jax.random.normal(ks[1], (hdh, E), jnp.float32),
        "ln1_g": jnp.ones((1, E), jnp.float32),
        "ln1_b": jnp.zeros((1, E), jnp.float32),
        "ln2_g": jnp.ones((1, E), jnp.float32),
        "ln2_b": jnp.zeros((1, E), jnp.float32),
        "w1":   scale * jax.random.normal(ks[2], (E, 4 * E), jnp.float32),
        "b1":   scale * jax.random.normal(ks[3], (1, 4 * E), jnp.float32),
        "w2":   scale * jax.random.normal(ks[4], (4 * E, E), jnp.float32),
        "b2":   scale * jax.random.normal(ks[5], (1, E), jnp.float32),
    }


def _reference_forward(tokens, params, *, num_heads, head_dim):
    def ln(x, g, b):
        mu = jnp.mean(x, axis=-1, keepdims=True)
        var = jnp.mean((x - mu) ** 2, axis=-1, keepdims=True)
        return (x - mu) * jax.lax.rsqrt(var + LN_EPS) * g + b

    N, L, E = tokens.shape
    hdh = num_heads * head_dim
    xn = ln(tokens, params["ln1_g"], params["ln1_b"])
    qkv = (xn @ params["wqkv"]).reshape(N, L, 3, num_heads, head_dim)
    qkv = qkv.transpose(2, 0, 3, 1, 4)
    q, k, v = qkv[0], qkv[1], qkv[2]                                   # (N,H,L,Dh)
    s = jnp.einsum("nhld,nhmd->nhlm", q, k) / math.sqrt(head_dim)
    causal = jnp.tril(jnp.ones((L, L), bool))
    s = jnp.where(causal, s, NEG_INF)
    p = jax.nn.softmax(s, axis=-1)
    wv = jnp.einsum("nhlm,nhmd->nhld", p, v)
    agg = wv.transpose(0, 2, 1, 3).reshape(N, L, hdh)
    attn = agg @ params["wo"] + tokens
    yn = ln(attn, params["ln2_g"], params["ln2_b"])
    h1 = jax.nn.gelu(yn @ params["w1"] + params["b1"], approximate=False)
    return h1 @ params["w2"] + params["b2"] + attn


if __name__ == "__main__":
    # small shapes consistent with the module
    N, L = 2, 8
    embedding_dim = 32
    num_heads = 4
    head_dim = 8

    key = jax.random.PRNGKey(0)
    k_tok, k_par = jax.random.split(key)
    tokens = jax.random.normal(k_tok, (N, L, embedding_dim), jnp.float32)
    params = init_params(k_par, embedding_dim, num_heads, head_dim)

    out = transformer_forward(tokens, params, num_heads=num_heads, head_dim=head_dim)
    out = jax.block_until_ready(out)

    ref = _reference_forward(tokens, params, num_heads=num_heads, head_dim=head_dim)
    err = float(jnp.max(jnp.abs(out - ref)))

    assert out.shape == (N, L, embedding_dim)
    assert bool(jnp.all(jnp.isfinite(out)))
    assert err < 2e-2, f"mismatch vs pure-JAX reference: max abs err {err}"
    print("KERNEL_OK")
</pallas_src>

<mosaic_0001>
module attributes {stable_mosaic.version = 11 : i64} {
  func.func @_qkv_kernel(%arg0: i32, %arg1: i32, %arg2: i32, %arg3: memref<1x8x32xf32, #tpu.memory_space<vmem>>, %arg4: memref<1x32xf32, #tpu.memory_space<vmem>>, %arg5: memref<1x32xf32, #tpu.memory_space<vmem>>, %arg6: memref<1x32x8xf32, #tpu.memory_space<vmem>>, %arg7: memref<1x32x8xf32, #tpu.memory_space<vmem>>, %arg8: memref<1x32x8xf32, #tpu.memory_space<vmem>>, %arg9: memref<1x1x8x8xf32, #tpu.memory_space<vmem>>, %arg10: memref<1x1x8x8xf32, #tpu.memory_space<vmem>>, %arg11: memref<1x1x8x8xf32, #tpu.memory_space<vmem>>) attributes {dimension_semantics = [#tpu.dimension_semantics<parallel>, #tpu.dimension_semantics<parallel>, #tpu.dimension_semantics<parallel>], iteration_bounds = array<i64: 2, 1, 4>, scalar_prefetch = 0 : i64, scratch_operands = 0 : i64, tpu.core_type = #tpu.core_type<tc>, window_params = [{transform_indices = @transform_0, window_bounds = array<i64: 1, 8, 32>}, {pipeline_mode = #tpu.pipeline_mode<synchronous>, transform_indices = @transform_1, window_bounds = array<i64: 1, 32>}, {pipeline_mode = #tpu.pipeline_mode<synchronous>, transform_indices = @transform_2, window_bounds = array<i64: 1, 32>}, {transform_indices = @transform_3, window_bounds = array<i64: 1, 32, 8>}, {transform_indices = @transform_4, window_bounds = array<i64: 1, 32, 8>}, {transform_indices = @transform_5, window_bounds = array<i64: 1, 32, 8>}, {transform_indices = @transform_6, window_bounds = array<i64: 1, 1, 8, 8>}, {transform_indices = @transform_7, window_bounds = array<i64: 1, 1, 8, 8>}, {transform_indices = @transform_8, window_bounds = array<i64: 1, 1, 8, 8>}]} {
    %c0 = arith.constant 0 : index
    %c0_0 = arith.constant 0 : index
    %c0_1 = arith.constant 0 : index
    %0 = vector.load %arg3[%c0, %c0_0, %c0_1] : memref<1x8x32xf32, #tpu.memory_space<vmem>>, vector<1x8x32xf32>
    %1 = vector.shape_cast %0 : vector<1x8x32xf32> to vector<8x32xf32>
    %c0_2 = arith.constant 0 : index
    %c0_3 = arith.constant 0 : index
    %2 = vector.load %arg4[%c0_2, %c0_3] : memref<1x32xf32, #tpu.memory_space<vmem>>, vector<1x32xf32>
    %3 = vector.shape_cast %2 : vector<1x32xf32> to vector<32xf32>
    %c0_4 = arith.constant 0 : index
    %c0_5 = arith.constant 0 : index
    %4 = vector.load %arg5[%c0_4, %c0_5] : memref<1x32xf32, #tpu.memory_space<vmem>>, vector<1x32xf32>
    %5 = vector.shape_cast %4 : vector<1x32xf32> to vector<32xf32>
    %cst = arith.constant dense<0.000000e+00> : vector<8xf32>
    %6 = vector.multi_reduction <add>, %1, %cst [1] : vector<8x32xf32> to vector<8xf32>
    %7 = vector.shape_cast %6 : vector<8xf32> to vector<8x1xf32>
    %cst_6 = arith.constant 3.200000e+01 : f32
    %8 = vector.broadcast %cst_6 : f32 to vector<8x1xf32>
    %9 = arith.divf %7, %8 : vector<8x1xf32>
    %10 = vector.broadcast %9 : vector<8x1xf32> to vector<8x32xf32>
    %11 = arith.subf %1, %10 : vector<8x32xf32>
    %12 = arith.mulf %11, %11 : vector<8x32xf32>
    %cst_7 = arith.constant dense<0.000000e+00> : vector<8xf32>
    %13 = vector.multi_reduction <add>, %12, %cst_7 [1] : vector<8x32xf32> to vector<8xf32>
    %14 = vector.shape_cast %13 : vector<8xf32> to vector<8x1xf32>
    %cst_8 = arith.constant 3.200000e+01 : f32
    %15 = vector.broadcast %cst_8 : f32 to vector<8x1xf32>
    %16 = arith.divf %14, %15 : vector<8x1xf32>
    %17 = vector.broadcast %9 : vector<8x1xf32> to vector<8x32xf32>
    %18 = arith.subf %1, %17 : vector<8x32xf32>
    %cst_9 = arith.constant 9.99999974E-6 : f32
    %19 = vector.broadcast %cst_9 : f32 to vector<8x1xf32>
    %20 = arith.addf %16, %19 : vector<8x1xf32>
    %21 = math.rsqrt %20 : vector<8x1xf32>
    %22 = vector.broadcast %21 : vector<8x1xf32> to vector<8x32xf32>
    %23 = arith.mulf %18, %22 : vector<8x32xf32>
    %24 = vector.shape_cast %3 : vector<32xf32> to vector<1x32xf32>
    %25 = vector.broadcast %24 : vector<1x32xf32> to vector<8x32xf32>
    %26 = arith.mulf %23, %25 : vector<8x32xf32>
    %27 = vector.shape_cast %5 : vector<32xf32> to vector<1x32xf32>
    %28 = vector.broadcast %27 : vector<1x32xf32> to vector<8x32xf32>
    %29 = arith.addf %26, %28 : vector<8x32xf32>
    %c0_10 = arith.constant 0 : index
    %c0_11 = arith.constant 0 : index
    %c0_12 = arith.constant 0 : index
    %30 = vector.load %arg6[%c0_10, %c0_11, %c0_12] : memref<1x32x8xf32, #tpu.memory_space<vmem>>, vector<1x32x8xf32>
    %31 = vector.shape_cast %30 : vector<1x32x8xf32> to vector<32x8xf32>
    %cst_13 = arith.constant dense<0.000000e+00> : vector<8x8xf32>
    %32 = tpu.matmul %29, %31, %cst_13 {dimension_numbers = #tpu.dot_dimension_numbers<[1], [0], [0], [1], [0, 0, 1, 1], [], []>} : vector<8x32xf32>, vector<32x8xf32>, vector<8x8xf32> -> vector<8x8xf32>
    %c0_14 = arith.constant 0 : index
    %c0_15 = arith.constant 0 : index
    %c0_16 = arith.constant 0 : index
    %33 = vector.load %arg7[%c0_14, %c0_15, %c0_16] : memref<1x32x8xf32, #tpu.memory_space<vmem>>, vector<1x32x8xf32>
    %34 = vector.shape_cast %33 : vector<1x32x8xf32> to vector<32x8xf32>
    %cst_17 = arith.constant dense<0.000000e+00> : vector<8x8xf32>
    %35 = tpu.matmul %29, %34, %cst_17 {dimension_numbers = #tpu.dot_dimension_numbers<[1], [0], [0], [1], [0, 0, 1, 1], [], []>} : vector<8x32xf32>, vector<32x8xf32>, vector<8x8xf32> -> vector<8x8xf32>
    %c0_18 = arith.constant 0 : index
    %c0_19 = arith.constant 0 : index
    %c0_20 = arith.constant 0 : index
    %36 = vector.load %arg8[%c0_18, %c0_19, %c0_20] : memref<1x32x8xf32, #tpu.memory_space<vmem>>, vector<1x32x8xf32>
    %37 = vector.shape_cast %36 : vector<1x32x8xf32> to vector<32x8xf32>
    %cst_21 = arith.constant dense<0.000000e+00> : vector<8x8xf32>
    %38 = tpu.matmul %29, %37, %cst_21 {dimension_numbers = #tpu.dot_dimension_numbers<[1], [0], [0], [1], [0, 0, 1, 1], [], []>} : vector<8x32xf32>, vector<32x8xf32>, vector<8x8xf32> -> vector<8x8xf32>
    %cst_22 = arith.constant 0.353553385 : f32
    %39 = vector.broadcast %cst_22 : f32 to vector<8x8xf32>
    %40 = arith.mulf %32, %39 : vector<8x8xf32>
    %c0_23 = arith.constant 0 : index
    %c0_24 = arith.constant 0 : index
    %c0_25 = arith.constant 0 : index
    %c0_26 = arith.constant 0 : index
    %41 = vector.load %arg9[%c0_23, %c0_24, %c0_25, %c0_26] : memref<1x1x8x8xf32, #tpu.memory_space<vmem>>, vector<1x1x8x8xf32>
    %42 = vector.shape_cast %41 : vector<1x1x8x8xf32> to vector<8x8xf32>
    %43 = vector.shape_cast %40 : vector<8x8xf32> to vector<1x1x8x8xf32>
    tpu.vector_store %arg9[%c0_23, %c0_24, %c0_25, %c0_26], %43 {strides = array<i32>} : memref<1x1x8x8xf32, #tpu.memory_space<vmem>>, vector<1x1x8x8xf32>,
    %c0_27 = arith.constant 0 : index
    %c0_28 = arith.constant 0 : index
    %c0_29 = arith.constant 0 : index
    %c0_30 = arith.constant 0 : index
    %44 = vector.load %arg10[%c0_27, %c0_28, %c0_29, %c0_30] : memref<1x1x8x8xf32, #tpu.memory_space<vmem>>, vector<1x1x8x8xf32>
    %45 = vector.shape_cast %44 : vector<1x1x8x8xf32> to vector<8x8xf32>
    %46 = vector.shape_cast %35 : vector<8x8xf32> to vector<1x1x8x8xf32>
    tpu.vector_store %arg10[%c0_27, %c0_28, %c0_29, %c0_30], %46 {strides = array<i32>} : memref<1x1x8x8xf32, #tpu.memory_space<vmem>>, vector<1x1x8x8xf32>,
    %c0_31 = arith.constant 0 : index
    %c0_32 = arith.constant 0 : index
    %c0_33 = arith.constant 0 : index
    %c0_34 = arith.constant 0 : index
    %47 = vector.load %arg11[%c0_31, %c0_32, %c0_33, %c0_34] : memref<1x1x8x8xf32, #tpu.memory_space<vmem>>, vector<1x1x8x8xf32>
    %48 = vector.shape_cast %47 : vector<1x1x8x8xf32> to vector<8x8xf32>
    %49 = vector.shape_cast %38 : vector<8x8xf32> to vector<1x1x8x8xf32>
    tpu.vector_store %arg11[%c0_31, %c0_32, %c0_33, %c0_34], %49 {strides = array<i32>} : memref<1x1x8x8xf32, #tpu.memory_space<vmem>>, vector<1x1x8x8xf32>,
    return
  }
  func.func @transform_0(%arg0: i32, %arg1: i32, %arg2: i32) -> (i32, i32, i32) {
    %c0_i32 = arith.constant 0 : i32
    %c0_i32_0 = arith.constant 0 : i32
    return %arg0, %arg1, %c0_i32 : i32, i32, i32
  }
  func.func @transform_1(%arg0: i32, %arg1: i32, %arg2: i32) -> (i32, i32) {
    %c0_i32 = arith.constant 0 : i32
    %c0_i32_0 = arith.constant 0 : i32
    %c0_i32_1 = arith.constant 0 : i32
    return %c0_i32, %c0_i32_0 : i32, i32
  }
  func.func @transform_2(%arg0: i32, %arg1: i32, %arg2: i32) -> (i32, i32) {
    %c0_i32 = arith.constant 0 : i32
    %c0_i32_0 = arith.constant 0 : i32
    %c0_i32_1 = arith.constant 0 : i32
    return %c0_i32, %c0_i32_0 : i32, i32
  }
  func.func @transform_3(%arg0: i32, %arg1: i32, %arg2: i32) -> (i32, i32, i32) {
    %c0_i32 = arith.constant 0 : i32
    %c0_i32_0 = arith.constant 0 : i32
    %c0_i32_1 = arith.constant 0 : i32
    return %arg2, %c0_i32, %c0_i32_0 : i32, i32, i32
  }
  func.func @transform_4(%arg0: i32, %arg1: i32, %arg2: i32) -> (i32, i32, i32) {
    %c0_i32 = arith.constant 0 : i32
    %c0_i32_0 = arith.constant 0 : i32
    %c0_i32_1 = arith.constant 0 : i32
    return %arg2, %c0_i32, %c0_i32_0 : i32, i32, i32
  }
  func.func @transform_5(%arg0: i32, %arg1: i32, %arg2: i32) -> (i32, i32, i32) {
    %c0_i32 = arith.constant 0 : i32
    %c0_i32_0 = arith.constant 0 : i32
    %c0_i32_1 = arith.constant 0 : i32
    return %arg2, %c0_i32, %c0_i32_0 : i32, i32, i32
  }
  func.func @transform_6(%arg0: i32, %arg1: i32, %arg2: i32) -> (i32, i32, i32, i32) {
    %c0_i32 = arith.constant 0 : i32
    %c0_i32_0 = arith.constant 0 : i32
    return %arg0, %arg2, %arg1, %c0_i32 : i32, i32, i32, i32
  }
  func.func @transform_7(%arg0: i32, %arg1: i32, %arg2: i32) -> (i32, i32, i32, i32) {
    %c0_i32 = arith.constant 0 : i32
    %c0_i32_0 = arith.constant 0 : i32
    return %arg0, %arg2, %arg1, %c0_i32 : i32, i32, i32, i32
  }
  func.func @transform_8(%arg0: i32, %arg1: i32, %arg2: i32) -> (i32, i32, i32, i32) {
    %c0_i32 = arith.constant 0 : i32
    %c0_i32_0 = arith.constant 0 : i32
    return %arg0, %arg2, %arg1, %c0_i32 : i32, i32, i32, i32
  }
}

</mosaic_0001>

<bundles_post_ra>
// kernel: tpu_custom_call.1
= control target key start
LH: loop header
LB: loop body
LE: loop exit
PB: predicated region body
PF: predicated region fallthrough
CT: control target
= control target key end

     0   :  { %s1576_s0 = inlined_call_operand.vmem [shape: f32[2,8,32], index: 0, kind: input, shape index: {}]   ;;  %s1577_s1 = inlined_call_operand.vmem [shape: f32[1,32], index: 1, kind: input, shape index: {}]   ;;  %s1578_s2 = inlined_call_operand.vmem [shape: f32[1,32], index: 2, kind: input, shape index: {}]   ;;  %s1579_s3 = inlined_call_operand.vmem [shape: f32[4,32,8], index: 3, kind: input, shape index: {}]   ;;  %s1580_s4 = inlined_call_operand.vmem [shape: f32[4,32,8], index: 4, kind: input, shape index: {}]   ;;  %s1581_s5 = inlined_call_operand.vmem [shape: f32[4,32,8], index: 5, kind: input, shape index: {}]   ;;  %s1582_s6 = inlined_call_operand.hbm [shape: f32[2,4,8,8], index: 6, kind: output, shape index: {0}]   ;;  %s1583_s7 = inlined_call_operand.hbm [shape: f32[2,4,8,8], index: 7, kind: output, shape index: {1}]   ;;  %s1584_s8 = inlined_call_operand.hbm [shape: f32[2,4,8,8], index: 8, kind: output, shape index: {2}]  }
   0x1   :  { %1589 = sst [smem:[#allocation9_spill]] %s1576_s0 }
   0x2   :  { %1590 = sst [smem:[#allocation10_spill]] %s1577_s1 }
   0x3   :  { %1591 = sst [smem:[#allocation11_spill]] %s1578_s2 }
   0x4   :  { %1592 = sst [smem:[#allocation12_spill]] %s1579_s3 }
   0x5   :  { %1593 = sst [smem:[#allocation13_spill]] %s1580_s4 }
   0x6   :  { %1594 = sst [smem:[#allocation14_spill]] %s1581_s5 }
   0x7   :  { %14 = vsyncpa [#allocation3], 0 }
   0x8   :  { %16 = vsyncpa [#allocation3 + $0x1], 0 }
   0x9   :  { %17 = vsyncpa [#allocation5], 0 }
   0xa   :  { %19 = vsyncpa [#allocation5 + $0x1], 0  ;;  %s1317_s27 = smov 0   ;;  %s1319_s28 = smov 0  }
   0xb   :  { %s1321_s29 = smov 0   ;;  %s1323_s30 = smov 0  }
   0xc   :  { %s1325_s9 = smov 0   ;;  %s1327_s10 = smov 0  }
   0xd   :  { %s1329_s11 = smov 0   ;;  %s1331_s12 = smov 0  }
   0xe LB: > { %s1586_s13 = sadd.s32 4294967295, %s1264_s12   ;;  %s1585_s14 = sadd.s32 4294967294, %s1264_s12   ;;  %s1264_s12 = sphi %s1331_s12, %s25_s12   ;;  %s1260_s11 = sphi %s1329_s11, %s1615_s11   ;;  %s1256_s10 = sphi %s1327_s10, %s1614_s10   ;;  %s1252_s9 = sphi %s1325_s9, %s1613_s9   ;;  %s1248_s30 = sphi %s1323_s30, %s1612_s30   ;;  %s1244_s29 = sphi %s1321_s29, %s1611_s29   ;;  %s1240_s28 = sphi %s1319_s28, %s1610_s28   ;;  %s1236_s27 = sphi %s1317_s27, %s1609_s27  }
   0xf   : > { %s37_s15 = sadd.s32 1, %s1256_s10  ;;  %s44_s16 = sadd.s32 1, %s1260_s11 }
  0x10   : > { %p38_p0 = scmp.ge.s32.totalorder %s37_s15, 4  ;;  %p213_p1 = scmp.ne.s32.totalorder %s1244_s29, %s1240_s28 }
  0x11   : > { %p214_p2 = scmp.eq.s32.totalorder %s1586_s13, 7  ;;  %p219_p5 = scmp.ne.s32.totalorder %s1240_s28, %s1236_s27 }
  0x12   : > { %s1617_s15 = smov (%p38_p0, %s37_s15), 0  ;;  %s1619_s16 = smov (!%p38_p0, %s44_s16), %s1260_s11 }
  0x13   : > { %s197_s17 = ssub.s32 %s1256_s10, %s1617_s15  ;;  %p1370_p3 = por %p214_p2, %p213_p1 }
  0x14   : > { %p46_p4 = scmp.ge.s32.totalorder %s1619_s16, 2  ;;  %p220_p6 = scmp.eq.s32.totalorder %s1585_s14, 7 }
  0x15   : > { %p928_p7 = scmp.ge.s32.totalorder %s1264_s12, 1  ;;  %p338_p9 = scmp.lt.s32.totalorder %s1264_s12, 9 }
  0x16   : > { %s1621_s16 = smov (%p46_p4, %s1619_s16), 0  ;;  %p1381_p8 = por %p220_p6, %p219_p5 }
  0x17   : > { %s196_s20 = ssub.s32 %s1260_s11, %s1621_s16  ;;  %s203_s21 = sadd.s32 1, %s1244_s29 }
  0x18   : > { %s198_s22 = sor.u32 %s197_s17, %s196_s20  ;;  %p339_p10 = pnand %p928_p7, %p338_p9 }
  0x19   : > { %p201_p11 = scmp.eq.s32.totalorder %s198_s22, 0  ;;  %p399_p12 = scmp.lt.s32.totalorder (!%p339_p10), %s1252_s9, 1  ;;  %vm424_vm0 = vcmask (!%p339_p10), 261120   ;;  %v1266_v7 = vmov (!%p339_p10), 0.0|0.0   ;;  %vm1267_vm1 = vmmov (!%p339_p10), 0   ;;  %v1268_v8 = vmov (!%p339_p10), 0.0  }
  0x1a   : > { %342 = sbr.rel (%p339_p10) target bundleno = 627 (0x273), region = 44  ;;  %s1597_s0 = sld [smem:[#allocation9_spill]] (!%p339_p10)  ;;  %1006 = vmatprep.subr.bf16.mxu0 (!%p339_p10), %v1266_v7  ;;  %1012 = vmatprep.subr.bf16.mxu1 (!%p339_p10), %v1266_v7  ;;  %vm679_vm2 = vcmask (!%p339_p10), 64512  }
  0x1b   : > { %s1390_s23 = scalar_select %p201_p11, %s1244_s29, %s203_s21  }
  0x1c   : > { %p406_p13 = scmp.lt.s32.totalorder (!%p339_p10), %s1248_s30, 3  ;;  %981 = vmatprep.mubr.msk.f32.mxu0 (!%p339_p10), %vm1267_vm1, %v1268_v8  ;;  %992 = vmatprep.mubr.msk.f32.mxu1 (!%p339_p10), %vm1267_vm1, %v1268_v8  ;;  %s1598_s3 = sld [smem:[#allocation12_spill]] (!%p339_p10) }
  0x1d   : > { %s1599_s4 = sld [smem:[#allocation13_spill]] (!%p339_p10)  ;;  %s1600_s5 = sld [smem:[#allocation14_spill]] (!%p339_p10) }
  0x1e   : > { %s1601_s1 = sld [smem:[#allocation10_spill]] (!%p339_p10)  ;;  %s1602_s2 = sld [smem:[#allocation11_spill]] (!%p339_p10) }
  0x21   : > { %s400_s24 = scalar_select %p399_p12, %s1252_s9, 1 }
  0x22   : > { %s407_s17 = scalar_select %p406_p13, %s1248_s30, 3 }
  0x23   : > { %s932_s25 = sshll.u32 %s400_s24, 3 }
  0x24   : > { %s405_s13 = scalar_lea.vmem %s1597_s0, %s932_s25  ;;  %v939_v25 = vld [vmem:[%s1601_s1] ss:$0 sm:$0xff] }
  0x25   : > { %v421_v0 = vld [vmem:[%s405_s13] sm:$0xff]  ;;  %s955_s13 = sshll.u32 %s407_s17, 5 }
  0x26   : > { %v425_v1 = vsel %vm424_vm0, %v421_v0, 0.0  ;;  %s410_s21 = scalar_lea.vmem %s1598_s3, %s955_s13  ;;  %s415_s25 = scalar_lea.vmem %s1599_s4, %s955_s13  ;;  %v940_v29 = vld [vmem:[%s1602_s2] ss:$0 sm:$0xff] }
  0x27   : > { %426 = vadd.xlane.f32.xlu0 %v425_v1  ;;  %v453_v9 = vld [vmem:[%s410_s21] sm:$0xff]  ;;  %v454_v10 = vld [vmem:[%s410_s21 + $0x8] sm:$0xff]  ;;  %v455_v11 = vld [vmem:[%s410_s21 + $0x10] sm:$0xff]  ;;  %s420_s14 = scalar_lea.vmem %s1600_s5, %s955_s13  ;;  %s1587_s13 = sand.u32 1, %s1240_s28  }
  0x28   : > { %v1007_v12 = vpack.c.bf16 %v454_v10, %v453_v9  ;;  %v530_v13 = vld [vmem:[%s415_s25] sm:$0xff]  ;;  %v531_v14 = vld [vmem:[%s415_s25 + $0x8] sm:$0xff]  ;;  %v456_v15 = vld [vmem:[%s410_s21 + $0x18] sm:$0xff]  ;;  %s1426_s26 = sshll.u32 %s1587_s13, 3 }
  0x29   : > { %v1013_v16 = vpack.c.bf16 %v531_v14, %v530_v13  ;;  %v532_v17 = vld [vmem:[%s415_s25 + $0x10] sm:$0xff]  ;;  %v533_v18 = vld [vmem:[%s415_s25 + $0x18] sm:$0xff]  ;;  %v1010_v19 = vpack.c.bf16 %v456_v15, %v455_v11  ;;  %v604_v27 = vld [vmem:[%s420_s14] sm:$0xff]  ;;  %s947_s25 = sshll.u32 %s1252_s9, 2  ;;  %s391_s22 = scalar_lea.vmem [#allocation4], %s1426_s26 }
  0x2a   : > { %1008 = vmatpush3.bf16.msra.mxu0 %v1007_v12  ;;  %v1016_v20 = vpack.c.bf16 %v533_v18, %v532_v17  ;;  %v605_v28 = vld [vmem:[%s420_s14 + $0x8] sm:$0xff]  ;;  %v606_v33 = vld [vmem:[%s420_s14 + $0x10] sm:$0xff]  ;;  %v607_v34 = vld [vmem:[%s420_s14 + $0x18] sm:$0xff]  ;;  %s706_s17 = sadd.s32 %s1248_s30, %s947_s25  ;;  %s1603_s14 = sadd.s32 4294967295, %s1264_s12  }
  0x2b   : > { %1014 = vmatpush3.bf16.msra.mxu1 %v1013_v16  ;;  %1009 = vmatprep.subr.bf16.mxu0 %v1266_v7  ;;  %v1019_v31 = vpack.c.bf16 %v605_v28, %v604_v27  ;;  %v1022_v35 = vpack.c.bf16 %v607_v34, %v606_v33  ;;  %s1431_s20 = sand.u32 1, %s1603_s14   ;;  %s1433_s21 = sshll.u32 %s706_s17, 7 }
  0x2c   : > { %1015 = vmatprep.subr.bf16.mxu1 %v1266_v7  ;;  %s726_s24 = sshll.u32 %s391_s22, 4  ;;  %s1588_s9 = scalar_lea.vmem [#allocation2], %s1426_s26  ;;  %s1445_s24 = int_to_ptr.vmem [resolvable:$true] %s726_s24 }
  0x2d   : > { %s710_s13 = sshll.u32 %s1588_s9, 4  ;;  %s1443_s2 = scalar_lea.hbm %s1583_s7, %s1433_s21  ;;  %s1454_s13 = int_to_ptr.vmem [resolvable:$true] %s710_s13 }
  0x2e   : > { %1011 = vmatpush3.bf16.msra.mxu0 %v1010_v19  ;;  %s1452_s17 = scalar_lea.hbm %s1582_s6, %s1433_s21  ;;  %s1110_s1 = scalar_lea.vmem %s1445_s24, 128 }
  0x2f   : > { %1017 = vmatpush3.bf16.msra.mxu1 %v1016_v20  ;;  %1018 = vmatprep.subr.bf16.mxu0 %v1266_v7  ;;  %p1111_p0 = scmp.ne.s32.totalorder %s1445_s24, %s1110_s1  ;;  %s1269_s14 = smov [#allocation4]  }
  0x30   : > { %s1114_s9 = sshll.u32 %s1269_s14, 4  ;;  %s1115_s9 = int_to_ptr.vmem [resolvable:$false] %s1114_s9 }
  0x31   : > { %p1112_p1 = pnand %p1111_p0, %p1370_p3  ;;  %s1116_s3 = scalar_lea.vmem %s1115_s9, 256 }
  0x32   : > { %p1117_p4 = scmp.lt.s32.totalorder %s1445_s24, %s1115_s9  ;;  %p1118_p5 = scmp.lt.s32.totalorder %s1116_s3, %s1110_s1 }
  0x33   : > { %p1113_p2 = pneg %p1112_p1 }
  0x34   : > { %p1119_p6 = por %p1118_p5, %p1117_p4 }
  0x36   : > { %p1120_p7 = pnand %p1119_p6, %p1113_p2 }
  0xb4   : > { %v427_v2 = vpop.xlane.xlu0 %426 }
  0xb5   : > { %v429_v3 = vmul.f32 0.03125, %v427_v2 }
  0xb7   : > { %v430_v4 = vsub.f32 %v421_v0, %v429_v3 }
  0xb9   : > { %v431_v5 = vmul.f32 %v430_v4, %v430_v4 }
  0xbb   : > { %v432_v6 = vsel %vm424_vm0, %v431_v5, 0.0 }
  0xbc   : > { %433 = vadd.xlane.f32.xlu0 %v432_v6 }
 0x149   : > { %v434_v21 = vpop.xlane.xlu0 %433 }
 0x14a   : > { %v435_v22 = vmul.f32 0.03125, %v434_v21 }
 0x14c   : > { %v436_v23 = vadd.f32 1e-05, %v435_v22 }
 0x14e   : > { %1108 = vrsqrt.f32 %v436_v23 }
 0x158   : > { %v1109_v24 = vpop.eup %1108 }
 0x159   : > { %v438_v26 = vmul.f32 %v1109_v24, %v430_v4 }
 0x15b   : > { %v445_v30 = vmul.f32 %v939_v25, %v438_v26 }
 0x15d   : > { %v452_v32 = vadd.f32 %v940_v29, %v445_v30 }
 0x15f   : > { %982 = vmatmul.mubr.msk.f32.vlgmr.msra.gmra.mrb[0].mxu0 %vm424_vm0, %v452_v32  ;;  %993 = vmatmul.mubr.msk.f32.vlgmr.msra.gmra.mrb[0].mxu1 %vm424_vm0, %v452_v32 }
 0x160   : > { %1020 = vmatpush3.bf16.msra.mxu0 %v1019_v31  ;;  %1003 = vmatprep.mubr.msk.f32.mxu0 %vm1267_vm1, %v1268_v8 }
 0x161   : > { %1021 = vmatprep.subr.bf16.mxu0 %v1266_v7 }
 0x164   : > { %1023 = vmatpush3.bf16.msra.mxu0 %v1022_v35 }
 0x167   : > { %1004 = vmatmul.mubr.msk.f32.vlgmr.msra.gmra.mrb[2].mxu0 %vm424_vm0, %v452_v32 }
 0x232   : > { %v526_v36 = vpop.f32.mrb[0].mxu0  ;;  %v600_v37 = vpop.f32.mrb[0].mxu1 }
 0x233   : > { %v678_v38 = vmul.f32 0.35355338, %v526_v36  ;;  %681 = vst.msk [vmem:[%s391_s22] sm:$0xff] %vm679_vm2, %v600_v37  ;;  %v983_v39 = vpop.f32.mrb[1].mxu0  ;;  %v994_v40 = vpop.f32.mrb[1].mxu1 }
 0x234   : > { %1123 = shalt.err (!%p1120_p7)
}
 0x235   : > { %s1124_s22 = scalar_lea.hbm %s1443_s2, 128  ;;  %s1128_s14 = scalar_lea.hbm %s1583_s7, 1024 }
 0x236   : > { %p1125_p9 = scmp.ne.s32.totalorder %s1443_s2, %s1124_s22  ;;  %p1129_p12 = scmp.lt.u32.totalorder %s1443_s2, %s1583_s7 }
 0x237   : > { %p1130_p13 = scmp.lt.u32.totalorder %s1128_s14, %s1124_s22  ;;  %p1132_p1 = scmp.lt.u32.totalorder %s1124_s22, %s1443_s2 }
 0x238   : > { %p1126_p10 = pnand %p1125_p9, %p1370_p3 }
 0x239   : > { %p1131_p0 = por %p1130_p13, %p1129_p12 }
 0x23a   : > { %p1127_p11 = pneg %p1126_p10 }
 0x23b   : > { %p1133_p2 = por %p1132_p1, %p1131_p0 }
 0x23d   : > { %p1134_p4 = pnand %p1133_p2, %p1127_p11 }
 0x23f   : > { %1137 = shalt.err (!%p1134_p4)
}
 0x240   : > { %s1604_s3 = scalar_lea.sflag [#allocation5], %s1431_s20  ;;  %s398_s0 = scalar_lea.vmem [#allocation6], %s1426_s26 }
 0x241   : > { %1025 = dma.vmem_to_hbm [thread:$0]  (%p1370_p3), %s1445_s24, 128, %s1443_s2, %s1604_s3  }
 0x242   : > { %s1483_s1 = sshll.u32 %s398_s0, 4  ;;  %s1605_s22 = scalar_lea.vmem [#allocation2], %s1426_s26  ;;  %s1512_s1 = int_to_ptr.vmem [resolvable:$true] %s1483_s1 }
 0x243   : > { %680 = vst.msk [vmem:[%s1605_s22] sm:$0xff] %vm679_vm2, %v678_v38  ;;  %s1606_s30 = sand.u32 1, %s1240_s28   ;;  %s1138_s14 = scalar_lea.vmem %s1454_s13, 128 }
 0x244   : > { %s684_s25 = scalar_lea.sflag [#allocation3], %s1606_s30  ;;  %p1139_p5 = scmp.ne.s32.totalorder %s1454_s13, %s1138_s14 }
 0x245   : > { %s1270_s9 = smov [#allocation2]  }
 0x246   : > { %p1140_p6 = pnand %p1139_p5, %p1370_p3  ;;  %s1142_s4 = sshll.u32 %s1270_s9, 4  ;;  %s1143_s4 = int_to_ptr.vmem [resolvable:$false] %s1142_s4 }
 0x247   : > { %s1144_s5 = scalar_lea.vmem %s1143_s4, 256  ;;  %p1145_p9 = scmp.lt.s32.totalorder %s1454_s13, %s1143_s4 }
 0x248   : > { %p1141_p7 = pneg %p1140_p6  ;;  %p1146_p10 = scmp.lt.s32.totalorder %s1144_s5, %s1138_s14 }
 0x24a   : > { %p1147_p11 = por %p1146_p10, %p1145_p9 }
 0x24c   : > { %p1148_p12 = pnand %p1147_p11, %p1141_p7 }
 0x24e   : > { %1151 = shalt.err (!%p1148_p12)
}
 0x24f   : > { %s1152_s2 = scalar_lea.hbm %s1452_s17, 128  ;;  %s1156_s22 = scalar_lea.hbm %s1582_s6, 1024 }
 0x250   : > { %p1153_p13 = scmp.ne.s32.totalorder %s1452_s17, %s1152_s2  ;;  %p1157_p2 = scmp.lt.u32.totalorder %s1452_s17, %s1582_s6 }
 0x251   : > { %p1158_p4 = scmp.lt.u32.totalorder %s1156_s22, %s1152_s2  ;;  %p1160_p6 = scmp.lt.u32.totalorder %s1152_s2, %s1452_s17 }
 0x252   : > { %p1154_p0 = pnand %p1153_p13, %p1370_p3 }
 0x253   : > { %p1159_p5 = por %p1158_p4, %p1157_p2 }
 0x254   : > { %p1155_p1 = pneg %p1154_p0 }
 0x255   : > { %p1161_p7 = por %p1160_p6, %p1159_p5 }
 0x257   : > { %p1162_p9 = pnand %p1161_p7, %p1155_p1 }
 0x259   : > { %1165 = shalt.err (!%p1162_p9)
}
 0x25a   : > { %1024 = dma.vmem_to_hbm [thread:$0]  (%p1370_p3), %s1454_s13, 128, %s1452_s17, %s684_s25   ;;  %v674_v41 = vpop.f32.mrb[2].mxu0 }
 0x25b   : > { %s1518_s9 = scalar_lea.hbm %s1584_s8, %s1433_s21  ;;  %682 = vst.msk [vmem:[%s398_s0] sm:$0xff] %vm679_vm2, %v674_v41  ;;  %v1005_v42 = vpop.f32.mrb[3].mxu0  ;;  %s1166_s2 = scalar_lea.vmem %s1512_s1, 128 }
 0x25c   : > { %p1167_p10 = scmp.ne.s32.totalorder %s1512_s1, %s1166_s2  ;;  %s1271_s13 = smov [#allocation6]  }
 0x25d   : > { %s1170_s17 = sshll.u32 %s1271_s13, 4  ;;  %s1171_s17 = int_to_ptr.vmem [resolvable:$false] %s1170_s17 }
 0x25e   : > { %p1168_p11 = pnand %p1167_p10, %p1370_p3  ;;  %s1172_s25 = scalar_lea.vmem %s1171_s17, 256 }
 0x25f   : > { %p1173_p13 = scmp.lt.s32.totalorder %s1512_s1, %s1171_s17  ;;  %p1174_p0 = scmp.lt.s32.totalorder %s1172_s25, %s1166_s2 }
 0x260   : > { %p1169_p12 = pneg %p1168_p11 }
 0x261   : > { %p1175_p1 = por %p1174_p0, %p1173_p13 }
 0x263   : > { %p1176_p2 = pnand %p1175_p1, %p1169_p12 }
 0x265   : > { %1179 = shalt.err (!%p1176_p2)
}
 0x266   : > { %s1180_s26 = scalar_lea.hbm %s1518_s9, 128  ;;  %s1184_s24 = scalar_lea.hbm %s1584_s8, 1024 }
 0x267   : > { %p1181_p4 = scmp.ne.s32.totalorder %s1518_s9, %s1180_s26  ;;  %p1185_p7 = scmp.lt.u32.totalorder %s1518_s9, %s1584_s8 }
 0x268   : > { %p1186_p9 = scmp.lt.u32.totalorder %s1184_s24, %s1180_s26  ;;  %p1188_p11 = scmp.lt.u32.totalorder %s1180_s26, %s1518_s9 }
 0x269   : > { %p1182_p5 = pnand %p1181_p4, %p1370_p3 }
 0x26a   : > { %p1187_p10 = por %p1186_p9, %p1185_p7 }
 0x26b   : > { %p1183_p6 = pneg %p1182_p5 }
 0x26c   : > { %p1189_p12 = por %p1188_p11, %p1187_p10 }
 0x26e   : > { %p1190_p13 = pnand %p1189_p12, %p1183_p6 }
 0x270   : > { %1193 = shalt.err (!%p1190_p13)
}
 0x271   : > { %s1607_s30 = scalar_lea.sflag [#allocation5], %s1431_s20 }
 0x272   : > { %1026 = dma.vmem_to_hbm [thread:$0]  (%p1370_p3), %s1512_s1, 128, %s1518_s9, %s1607_s30  }
 0x273 PF: > { %p1040_p0 = scmp.ge.s32.totalorder %s1264_s12, 2  ;;  %s754_s4 = sand.u32 1, %s1236_s27  }
 0x274   : > { %s755_s5 = scalar_lea.sflag [#allocation3], %s754_s4 }
 0x275   : > { %p1031_p1 = pnand %p1040_p0, %p1381_p8 }
 0x277   : > { %1227 = dma.done.wait (!%p1031_p1), %s755_s5, 128  }
 0x278   : > { %1229 = vsyncadd (!%p1031_p1), %s755_s5, 4294967168  ;;  %s1608_s14 = sadd.s32 4294967294, %s1264_s12  }
 0x279   : > { %s763_s2 = sand.u32 1, %s1608_s14  }
 0x27a   : > { %s764_s18 = scalar_lea.sflag [#allocation5], %s763_s2 }
 0x27b   : > { %1231 = dma.done.wait (!%p1031_p1), %s764_s18, 256  }
 0x27c   : > { %1233 = vsyncadd (!%p1031_p1), %s764_s18, 4294967040  ;;  %s25_s12 = sadd.s32 1, %s1264_s12   ;;  %s1609_s27 = smov %s1240_s28 }
 0x27d   : > { %p22_p3 = scmp.ge.s32.totalorder %s25_s12, 10   ;;  %s1610_s28 = smov %s1244_s29 }
 0x27e   : > { %s1611_s29 = smov %s1390_s23  ;;  %s1612_s30 = smov %s1256_s10 }
 0x27f   : > { %s1613_s9 = smov %s1260_s11  ;;  %s1614_s10 = smov %s1617_s15 }
 0x280   : > { %s1615_s11 = smov %s1621_s16  ;;  %24 = sbr.rel (!%p22_p3) target bundleno = 14 (0xe), region = 120 }
 0x287   :  { %778 = vsyncpa [#allocation3], 1 }
 0x288   :  { %780 = vsyncpa [#allocation3 + $0x1], 1 }
 0x289   :  { %781 = vsyncpa [#allocation5], 1 }
 0x28a   :  { %783 = vsyncpa [#allocation5 + $0x1], 1 }

</bundles_post_ra>
